<compile_context>
chip_gen: v7x
topology: tpu7x:2x2x1
jax: 0.10.0
libtpu: 0.0.40
codegen_flags: <defaults>
</compile_context>

<pallas_src>
import jax
import jax.numpy as jnp
from jax.experimental import pallas as pl
from jax.experimental.pallas import tpu as pltpu

# Model dimensions (VOCAB stands in for len(train_bag)).
VOCAB = 512
H0 = 256
H1 = 128
NUM_CLASSES = 5
OUT_PAD = 128        # lane-dense padded output width (wrapper slices back to 5)


def _round_up(n, m):
    return ((n + m - 1) // m) * m


# ----------------------------------------------------------------------------
# One-time parameter preparation (outside the per-call hot path).
# ----------------------------------------------------------------------------
def fold_params(params):
    """Fold the three bias-only linears into one affine map, pad to 128 lanes,
    cast the folded weight to bf16 once. Mathematically identical to the
    layerwise forward because there are no activations between layers."""
    wf = params["w0"] @ params["w1"] @ params["w2"]                              # (V, 5) f32
    bf = (params["b0"] @ params["w1"] + params["b1"]) @ params["w2"] + params["b2"]
    v = wf.shape[0]
    wf_p = jnp.zeros((v, OUT_PAD), jnp.float32).at[:, :NUM_CLASSES].set(wf)
    bf_p = jnp.zeros((1, OUT_PAD), jnp.float32).at[:, :NUM_CLASSES].set(bf)
    return {"wf": wf_p.astype(jnp.bfloat16),   # bf16 MXU operand, cast once
            "bf": bf_p}                        # bias stays f32


# ----------------------------------------------------------------------------
# Kernels.
# ----------------------------------------------------------------------------
def _folded_kernel(x_ref, wf_ref, bf_ref, o_ref):
    # Single MXU dot: (tb, V)bf16 @ (V, 128)bf16 -> f32, + f32 bias.
    # x tile is cast to bf16 in-kernel (no wrapper HBM pass for the cast).
    o_ref[...] = jnp.dot(x_ref[...].astype(jnp.bfloat16), wf_ref[...],
                         preferred_element_type=jnp.float32) + bf_ref[...]


def _folded_kernel_ktiled(x_ref, wf_ref, bf_ref, o_ref, acc_ref):
    # K-tiled variant for very large vocab: f32 accumulator, bias on last k step.
    k = pl.program_id(1)

    @pl.when(k == 0)
    def _init():
        acc_ref[...] = jnp.zeros_like(acc_ref)

    acc_ref[...] += jnp.dot(x_ref[...].astype(jnp.bfloat16), wf_ref[...],
                            preferred_element_type=jnp.float32)

    @pl.when(k == pl.num_programs(1) - 1)
    def _fin():
        o_ref[...] = acc_ref[...] + bf_ref[...]


# ----------------------------------------------------------------------------
# Wrapper.
# ----------------------------------------------------------------------------
def linear_classfy_forward(x, folded, *, batch_tile=512, k_tile=None):
    """x: (B, VOCAB) float32; folded: output of fold_params()."""
    wf, bf = folded["wf"], folded["bf"]
    B, V = x.shape
    assert wf.shape == (V, OUT_PAD)

    # Batch tile: sublane-aligned (multiple of 8 for f32); for large B make sure
    # there are at least 2 grid steps so v7x can shard the batch over its 2 TCs.
    if B <= 8:
        tb = B
    else:
        tb = min(_round_up(batch_tile, 8), max(8, _round_up(pl.cdiv(B, 2), 8)))
    nb = pl.cdiv(B, tb)

    # K (vocab) tiling: whole K by default (fits VMEM at this size). For realistic
    # CountVectorizer vocab sizes pass k_tile (multiple of 128 dividing V) so
    # per-buffer VMEM stays in the few-MB range (mandatory on v7x's 64 MiB VMEM).
    tk = V if k_tile is None else min(k_tile, V)
    nk = pl.cdiv(V, tk)
    if nk > 1:
        assert V % tk == 0, "k_tile must divide VOCAB (OOB K reads would corrupt the sum)"

    flops = 2 * B * V * OUT_PAD
    bytes_accessed = (x.size * x.dtype.itemsize + wf.size * 2 + bf.size * 4
                      + B * OUT_PAD * 4)

    def _make_call(single_buffer_resident):
        # Resident (constant-index) operands: request a single VMEM buffer
        # instead of the default double buffer.
        res_kw = ({"pipeline_mode": pl.Buffered(1)}
                  if single_buffer_resident else {})
        if nk == 1:
            kernel = _folded_kernel
            grid = (nb,)
            in_specs = [
                pl.BlockSpec((tb, V), lambda i: (i, 0)),                   # x tile (streamed)
                pl.BlockSpec((V, OUT_PAD), lambda i: (0, 0), **res_kw),    # Wf (resident)
                pl.BlockSpec((1, OUT_PAD), lambda i: (0, 0), **res_kw),    # bf (resident)
            ]
            out_spec = pl.BlockSpec((tb, OUT_PAD), lambda i: (i, 0))
            scratch = ()
            sem = ("parallel",)
        else:
            kernel = _folded_kernel_ktiled
            grid = (nb, nk)                                                # K axis last
            in_specs = [
                pl.BlockSpec((tb, tk), lambda i, k: (i, k)),               # x tile
                pl.BlockSpec((tk, OUT_PAD), lambda i, k: (k, 0)),          # Wf k-block (streamed)
                pl.BlockSpec((1, OUT_PAD), lambda i, k: (0, 0), **res_kw), # bf (resident)
            ]
            out_spec = pl.BlockSpec((tb, OUT_PAD), lambda i, k: (i, 0))
            scratch = [pltpu.VMEM((tb, OUT_PAD), jnp.float32)]
            sem = ("parallel", "arbitrary")

        return pl.pallas_call(
            kernel,
            out_shape=jax.ShapeDtypeStruct((B, OUT_PAD), jnp.float32),
            grid=grid,
            in_specs=in_specs,
            out_specs=out_spec,
            scratch_shapes=scratch,
            compiler_params=pltpu.CompilerParams(dimension_semantics=sem),
            cost_estimate=pl.CostEstimate(
                flops=flops, transcendentals=0, bytes_accessed=bytes_accessed),
        )

    try:
        out_padded = jax.block_until_ready(_make_call(True)(x, wf, bf))
    except Exception:
        # pl.Buffered(1) not supported on this jax build -> default double buffering.
        out_padded = _make_call(False)(x, wf, bf)

    return out_padded[:, :NUM_CLASSES]


# ----------------------------------------------------------------------------
# Init + self-test.
# ----------------------------------------------------------------------------
def init_params(key):
    """Deterministic init matching nn.Linear default (U(-1/sqrt(fan_in), +))."""
    ks = jax.random.split(key, 6)

    def linear(kw, kb, fan_in, fan_out):
        bound = 1.0 / jnp.sqrt(jnp.float32(fan_in))
        w = jax.random.uniform(kw, (fan_in, fan_out), jnp.float32, -bound, bound)
        b = jax.random.uniform(kb, (1, fan_out), jnp.float32, -bound, bound)
        return w, b

    w0, b0 = linear(ks[0], ks[1], VOCAB, H0)
    w1, b1 = linear(ks[2], ks[3], H0, H1)
    w2, b2 = linear(ks[4], ks[5], H1, NUM_CLASSES)
    return {"w0": w0, "b0": b0, "w1": w1, "b1": b1, "w2": w2, "b2": b2}


if __name__ == "__main__":
    key = jax.random.PRNGKey(0)
    pkey, xkey = jax.random.split(key)
    params = init_params(pkey)
    folded = fold_params(params)      # one-time prep, outside the per-call hot path

    batch = 8
    x = jax.random.uniform(xkey, (batch, VOCAB), jnp.float32)  # bag-of-words-like input

    out = linear_classfy_forward(x, folded)
    out = jax.block_until_ready(out)
    assert out.shape == (batch, NUM_CLASSES)

    # Reference with the kernel's exact math: bf16 x / bf16 folded weight, f32 accum.
    ref_exact = (jnp.dot(x.astype(jnp.bfloat16), folded["wf"],
                         preferred_element_type=jnp.float32)
                 + folded["bf"])[:, :NUM_CLASSES]
    assert jnp.allclose(out, ref_exact, atol=1e-2, rtol=1e-2)

    # Loose sanity check against the full-f32 3-layer PyTorch math.
    ref_f32 = ((x @ params["w0"] + params["b0"]) @ params["w1"] + params["b1"]) \
              @ params["w2"] + params["b2"]
    assert jnp.allclose(out, ref_f32, atol=5e-2, rtol=5e-2)

    print("KERNEL_OK")
</pallas_src>

<mosaic_0001>
module attributes {stable_mosaic.version = 11 : i64} {
  func.func @_folded_kernel(%arg0: i32, %arg1: memref<8x512xf32, #tpu.memory_space<vmem>>, %arg2: memref<512x128xbf16, #tpu.memory_space<vmem>>, %arg3: memref<1x128xf32, #tpu.memory_space<vmem>>, %arg4: memref<8x128xf32, #tpu.memory_space<vmem>>) attributes {dimension_semantics = [#tpu.dimension_semantics<parallel>], iteration_bounds = array<i64: 1>, scalar_prefetch = 0 : i64, scratch_operands = 0 : i64, tpu.core_type = #tpu.core_type<tc>, window_params = [{transform_indices = @transform_0, window_bounds = array<i64: 8, 512>}, {pipeline_mode = #tpu.pipeline_mode<synchronous>, transform_indices = @transform_1, window_bounds = array<i64: 512, 128>}, {pipeline_mode = #tpu.pipeline_mode<synchronous>, transform_indices = @transform_2, window_bounds = array<i64: 1, 128>}, {transform_indices = @transform_3, window_bounds = array<i64: 8, 128>}]} {
    %c0 = arith.constant 0 : index
    %c0_0 = arith.constant 0 : index
    %0 = vector.load %arg1[%c0, %c0_0] : memref<8x512xf32, #tpu.memory_space<vmem>>, vector<8x512xf32>
    %1 = arith.truncf %0 : vector<8x512xf32> to vector<8x512xbf16>
    %c0_1 = arith.constant 0 : index
    %c0_2 = arith.constant 0 : index
    %2 = vector.load %arg2[%c0_1, %c0_2] : memref<512x128xbf16, #tpu.memory_space<vmem>>, vector<512x128xbf16>
    %cst = arith.constant dense<0.000000e+00> : vector<8x128xf32>
    %3 = tpu.matmul %1, %2, %cst {dimension_numbers = #tpu.dot_dimension_numbers<[1], [0], [0], [1], [0, 0, 1, 1], [], []>} : vector<8x512xbf16>, vector<512x128xbf16>, vector<8x128xf32> -> vector<8x128xf32>
    %c0_3 = arith.constant 0 : index
    %c0_4 = arith.constant 0 : index
    %4 = vector.load %arg3[%c0_3, %c0_4] : memref<1x128xf32, #tpu.memory_space<vmem>>, vector<1x128xf32>
    %5 = vector.broadcast %4 : vector<1x128xf32> to vector<8x128xf32>
    %6 = arith.addf %3, %5 : vector<8x128xf32>
    %c0_5 = arith.constant 0 : index
    %c0_6 = arith.constant 0 : index
    %7 = vector.load %arg4[%c0_5, %c0_6] : memref<8x128xf32, #tpu.memory_space<vmem>>, vector<8x128xf32>
    tpu.vector_store %arg4[%c0_5, %c0_6], %6 {strides = array<i32>} : memref<8x128xf32, #tpu.memory_space<vmem>>, vector<8x128xf32>,
    return
  }
  func.func @transform_0(%arg0: i32) -> (i32, i32) {
    %c0_i32 = arith.constant 0 : i32
    %c0_i32_0 = arith.constant 0 : i32
    return %arg0, %c0_i32 : i32, i32
  }
  func.func @transform_1(%arg0: i32) -> (i32, i32) {
    %c0_i32 = arith.constant 0 : i32
    %c0_i32_0 = arith.constant 0 : i32
    %c0_i32_1 = arith.constant 0 : i32
    return %c0_i32, %c0_i32_0 : i32, i32
  }
  func.func @transform_2(%arg0: i32) -> (i32, i32) {
    %c0_i32 = arith.constant 0 : i32
    %c0_i32_0 = arith.constant 0 : i32
    %c0_i32_1 = arith.constant 0 : i32
    return %c0_i32, %c0_i32_0 : i32, i32
  }
  func.func @transform_3(%arg0: i32) -> (i32, i32) {
    %c0_i32 = arith.constant 0 : i32
    %c0_i32_0 = arith.constant 0 : i32
    return %arg0, %c0_i32 : i32, i32
  }
}

module attributes {stable_mosaic.version = 11 : i64} {
  func.func @_folded_kernel(%arg0: i32, %arg1: memref<8x512xf32, #tpu.memory_space<vmem>>, %arg2: memref<512x128xbf16, #tpu.memory_space<vmem>>, %arg3: memref<1x128xf32, #tpu.memory_space<vmem>>, %arg4: memref<8x128xf32, #tpu.memory_space<vmem>>) attributes {dimension_semantics = [#tpu.dimension_semantics<parallel>], iteration_bounds = array<i64: 1>, scalar_prefetch = 0 : i64, scratch_operands = 0 : i64, tpu.core_type = #tpu.core_type<tc>, window_params = [{transform_indices = @transform_0, window_bounds = array<i64: 8, 512>}, {pipeline_mode = #tpu.pipeline_mode<synchronous>, transform_indices = @transform_1, window_bounds = array<i64: 512, 128>}, {pipeline_mode = #tpu.pipeline_mode<synchronous>, transform_indices = @transform_2, window_bounds = array<i64: 1, 128>}, {transform_indices = @transform_3, window_bounds = array<i64: 8, 128>}]} {
    %c0 = arith.constant 0 : index
    %c0_0 = arith.constant 0 : index
    %0 = vector.load %arg1[%c0, %c0_0] : memref<8x512xf32, #tpu.memory_space<vmem>>, vector<8x512xf32>
    %1 = arith.truncf %0 : vector<8x512xf32> to vector<8x512xbf16>
    %c0_1 = arith.constant 0 : index
    %c0_2 = arith.constant 0 : index
    %2 = vector.load %arg2[%c0_1, %c0_2] : memref<512x128xbf16, #tpu.memory_space<vmem>>, vector<512x128xbf16>
    %cst = arith.constant dense<0.000000e+00> : vector<8x128xf32>
    %3 = tpu.matmul %1, %2, %cst {dimension_numbers = #tpu.dot_dimension_numbers<[1], [0], [0], [1], [0, 0, 1, 1], [], []>} : vector<8x512xbf16>, vector<512x128xbf16>, vector<8x128xf32> -> vector<8x128xf32>
    %c0_3 = arith.constant 0 : index
    %c0_4 = arith.constant 0 : index
    %4 = vector.load %arg3[%c0_3, %c0_4] : memref<1x128xf32, #tpu.memory_space<vmem>>, vector<1x128xf32>
    %5 = vector.broadcast %4 : vector<1x128xf32> to vector<8x128xf32>
    %6 = arith.addf %3, %5 : vector<8x128xf32>
    %c0_5 = arith.constant 0 : index
    %c0_6 = arith.constant 0 : index
    %7 = vector.load %arg4[%c0_5, %c0_6] : memref<8x128xf32, #tpu.memory_space<vmem>>, vector<8x128xf32>
    tpu.vector_store %arg4[%c0_5, %c0_6], %6 {strides = array<i32>} : memref<8x128xf32, #tpu.memory_space<vmem>>, vector<8x128xf32>,
    return
  }
  func.func @transform_0(%arg0: i32) -> (i32, i32) {
    %c0_i32 = arith.constant 0 : i32
    %c0_i32_0 = arith.constant 0 : i32
    return %arg0, %c0_i32 : i32, i32
  }
  func.func @transform_1(%arg0: i32) -> (i32, i32) {
    %c0_i32 = arith.constant 0 : i32
    %c0_i32_0 = arith.constant 0 : i32
    %c0_i32_1 = arith.constant 0 : i32
    return %c0_i32, %c0_i32_0 : i32, i32
  }
  func.func @transform_2(%arg0: i32) -> (i32, i32) {
    %c0_i32 = arith.constant 0 : i32
    %c0_i32_0 = arith.constant 0 : i32
    %c0_i32_1 = arith.constant 0 : i32
    return %c0_i32, %c0_i32_0 : i32, i32
  }
  func.func @transform_3(%arg0: i32) -> (i32, i32) {
    %c0_i32 = arith.constant 0 : i32
    %c0_i32_0 = arith.constant 0 : i32
    return %arg0, %c0_i32 : i32, i32
  }
}

</mosaic_0001>

<bundles_post_ra>
// kernel: tpu_custom_call.1
= control target key start
LH: loop header
LB: loop body
LE: loop exit
PB: predicated region body
PF: predicated region fallthrough
CT: control target
= control target key end

     0   :  { %8 = vsyncpa [#allocation3], 0  ;;  %s667_s0 = inlined_call_operand.hbm [shape: f32[8,512], index: 0, kind: input, shape index: {}]   ;;  %s668_s1 = inlined_call_operand.hbm [shape: bf16[512,128], index: 1, kind: input, shape index: {}]   ;;  %s669_s2 = inlined_call_operand.vmem [shape: f32[1,128], index: 2, kind: input, shape index: {}]   ;;  %s670_s3 = inlined_call_operand.hbm [shape: f32[8,128], index: 3, kind: output, shape index: {}]  }
   0x1   :  { %9 = vsyncpa [#allocation6], 0 }
   0x2   :  { %10 = vsyncpa [#allocation4], 0  ;;  %s596_s12 = smov [#allocation2]   ;;  %s597_s14 = smov [#allocation5]  }
   0x3   :  { %s17_s13 = sshll.u32 %s596_s12, 4  ;;  %s26_s15 = sshll.u32 %s597_s14, 4  ;;  %s18_s13 = int_to_ptr.vmem [resolvable:$true] %s17_s13  ;;  %s621_s15 = int_to_ptr.vmem [resolvable:$true] %s26_s15 }
   0x4   :  { %s524_s18 = scalar_lea.hbm %s667_s0, 512 }
   0x5   :  { %p525_p0 = scmp.ne.s32.totalorder %s667_s0, %s524_s18  ;;  %p528_p1 = scmp.lt.u32.totalorder %s524_s18, %s667_s0 }
   0x7   :  { %p530_p2 = pnand %p528_p1, %p525_p0 }
   0x9   :  { %533 = shalt.err (!%p530_p2)
}
   0xa   :  { %s534_s23 = scalar_lea.vmem %s18_s13, 512  ;;  %p539_p4 = scmp.lt.s32.totalorder %s18_s13, %s18_s13 }
   0xb   :  { %p535_p3 = scmp.ne.s32.totalorder %s18_s13, %s534_s23  ;;  %p540_p5 = scmp.lt.s32.totalorder %s534_s23, %s534_s23 }
   0xd   :  { %p541_p6 = por %p540_p5, %p539_p4 }
   0xf   :  { %p542_p7 = pnand %p541_p6, %p535_p3 }
  0x11   :  { %545 = shalt.err (!%p542_p7)
}
  0x12   :  { %20 = dma.hbm_to_vmem [thread:$0]  %s667_s0, 512, %s18_s13, [#allocation3]  }
  0x13   :  { %s546_s28 = scalar_lea.hbm %s668_s1, 4096 }
  0x14   :  { %p547_p8 = scmp.ne.s32.totalorder %s668_s1, %s546_s28  ;;  %p550_p9 = scmp.lt.u32.totalorder %s546_s28, %s668_s1 }
  0x16   :  { %p552_p10 = pnand %p550_p9, %p547_p8 }
  0x18   :  { %555 = shalt.err (!%p552_p10)
}
  0x19   :  { %s556_s6 = scalar_lea.vmem %s621_s15, 4096  ;;  %p561_p12 = scmp.lt.s32.totalorder %s621_s15, %s621_s15 }
  0x1a   :  { %p557_p11 = scmp.ne.s32.totalorder %s621_s15, %s556_s6  ;;  %p562_p13 = scmp.lt.s32.totalorder %s556_s6, %s556_s6 }
  0x1c   :  { %p563_p0 = por %p562_p13, %p561_p12 }
  0x1e   :  { %p564_p1 = pnand %p563_p0, %p557_p11 }
  0x20   :  { %567 = shalt.err (!%p564_p1)
}
  0x21   :  { %s598_s0 = smov 64   ;;  %s599_s7 = smov 4  }
  0x22   :  { %32 = dma.hbm_to_vmem [thread:$0]  %s668_s1, 4096, %s621_s15, [#allocation6], %s598_s0, %s598_s0, %s599_s7  }
  0x23   :  { %590 = dma.done.wait [#allocation3], 512  }
  0x24   :  { %591 = vsyncadd [#allocation3], 4294966784 }
  0x25   :  { %592 = dma.done.wait [#allocation6], 4096  }
  0x26   :  { %593 = vsyncadd [#allocation6], 4294963200  ;;  %v492_v0 = vld [vmem:[#allocation5 + $0x40] sm:$0xff]   ;;  %v496_v4 = vld [vmem:[#allocation5 + $0x48] sm:$0xff]   ;;  %s600_s11 = smov [#allocation7]  }
  0x27   :  { %v493_v1 = vld [vmem:[#allocation5 + $0xc0] sm:$0xff]   ;;  %443 = vmatprep.subr.bf16.mxu0 %v492_v0  ;;  %v497_v5 = vld [vmem:[#allocation5 + $0xc8] sm:$0xff]   ;;  %v500_v8 = vld [vmem:[#allocation5 + $0x50] sm:$0xff]   ;;  %s400_s12 = sshll.u32 %s600_s11, 4  ;;  %s401_s12 = int_to_ptr.vmem [resolvable:$true] %s400_s12 }
  0x28   :  { %v494_v2 = vld [vmem:[#allocation5] sm:$0xff]   ;;  %465 = vmatprep.subr.bf16.mxu1 %v493_v1  ;;  %v498_v6 = vld [vmem:[#allocation5 + $0x8] sm:$0xff]   ;;  %v501_v9 = vld [vmem:[#allocation5 + $0xd0] sm:$0xff]   ;;  %s568_s13 = scalar_lea.vmem %s401_s12, 128  ;;  %p573_p3 = scmp.lt.s32.totalorder %s401_s12, %s401_s12 }
  0x29   :  { %v495_v3 = vld [vmem:[#allocation5 + $0x80] sm:$0xff]   ;;  %444 = vmatpush3.bf16.msra.mxu0 %v494_v2  ;;  %v499_v7 = vld [vmem:[#allocation5 + $0x88] sm:$0xff]   ;;  %v502_v10 = vld [vmem:[#allocation5 + $0x10] sm:$0xff]   ;;  %p569_p2 = scmp.ne.s32.totalorder %s401_s12, %s568_s13  ;;  %p574_p4 = scmp.lt.s32.totalorder %s568_s13, %s568_s13 }
  0x2a   :  { %466 = vmatpush3.bf16.msra.mxu1 %v495_v3  ;;  %445 = vmatprep.subr.bf16.mxu0 %v496_v4  ;;  %v503_v11 = vld [vmem:[#allocation5 + $0x90] sm:$0xff]   ;;  %v504_v12 = vld [vmem:[#allocation5 + $0x58] sm:$0xff]   ;;  %v508_v16 = vld [vmem:[#allocation5 + $0x60] sm:$0xff]  }
  0x2b   :  { %467 = vmatprep.subr.bf16.mxu1 %v497_v5  ;;  %v505_v13 = vld [vmem:[#allocation5 + $0xd8] sm:$0xff]   ;;  %v509_v17 = vld [vmem:[#allocation5 + $0xe0] sm:$0xff]   ;;  %v512_v20 = vld [vmem:[#allocation5 + $0x68] sm:$0xff]   ;;  %p575_p5 = por %p574_p4, %p573_p3 }
  0x2c   :  { %v506_v14 = vld [vmem:[#allocation5 + $0x18] sm:$0xff]   ;;  %v510_v18 = vld [vmem:[#allocation5 + $0x20] sm:$0xff]   ;;  %v513_v21 = vld [vmem:[#allocation5 + $0xe8] sm:$0xff]  }
  0x2d   :  { %446 = vmatpush3.bf16.msra.mxu0 %v498_v6  ;;  %v507_v15 = vld [vmem:[#allocation5 + $0x98] sm:$0xff]   ;;  %v511_v19 = vld [vmem:[#allocation5 + $0xa0] sm:$0xff]   ;;  %v514_v22 = vld [vmem:[#allocation5 + $0x28] sm:$0xff]   ;;  %p576_p6 = pnand %p575_p5, %p569_p2 }
  0x2e   :  { %468 = vmatpush3.bf16.msra.mxu1 %v499_v7  ;;  %447 = vmatprep.subr.bf16.mxu0 %v500_v8  ;;  %v515_v23 = vld [vmem:[#allocation5 + $0xa8] sm:$0xff]   ;;  %v516_v24 = vld [vmem:[#allocation5 + $0x70] sm:$0xff]   ;;  %v520_v28 = vld [vmem:[#allocation5 + $0x78] sm:$0xff]  }
  0x2f   :  { %469 = vmatprep.subr.bf16.mxu1 %v501_v9  ;;  %v517_v25 = vld [vmem:[#allocation5 + $0xf0] sm:$0xff]   ;;  %v521_v29 = vld [vmem:[#allocation5 + $0xf8] sm:$0xff]   ;;  %v43_v32 = vld [vmem:[#allocation2 + $0x8] sm:$0xff] }
  0x30   :  { %v518_v26 = vld [vmem:[#allocation5 + $0x30] sm:$0xff]   ;;  %v522_v30 = vld [vmem:[#allocation5 + $0x38] sm:$0xff]   ;;  %v42_v34 = vld [vmem:[#allocation2] sm:$0xff]  ;;  %v47_v35 = vpack.c.bf16 %v43_v32, %v43_v32 }
  0x31   :  { %448 = vmatpush3.bf16.msra.mxu0 %v502_v10  ;;  %v519_v27 = vld [vmem:[#allocation5 + $0xb0] sm:$0xff]   ;;  %v523_v31 = vld [vmem:[#allocation5 + $0xb8] sm:$0xff]   ;;  %v46_v37 = vpack.c.bf16 %v42_v34, %v42_v34  ;;  %v410_v42 = vld [vmem:[%s669_s2] ss:$0 sm:$0xff] }
  0x32   :  { %470 = vmatpush3.bf16.msra.mxu1 %v503_v11  ;;  %449 = vmatprep.subr.bf16.mxu0 %v504_v12  ;;  %v45_v33 = vld [vmem:[#allocation2 + $0x18] sm:$0xff]  ;;  %v44_v38 = vld [vmem:[#allocation2 + $0x10] sm:$0xff] }
  0x33   :  { %471 = vmatprep.subr.bf16.mxu1 %v505_v13  ;;  %v49_v36 = vpack.c.bf16 %v45_v33, %v45_v33  ;;  %v48_v39 = vpack.c.bf16 %v44_v38, %v44_v38  ;;  %345 = vmatprep.mubr.bf16.mxu0 %v47_v35 }
  0x35   :  { %450 = vmatpush3.bf16.msra.mxu0 %v506_v14  ;;  %385 = vmatprep.mubr.bf16.mxu1 %v49_v36 }
  0x36   :  { %472 = vmatpush3.bf16.msra.mxu1 %v507_v15  ;;  %451 = vmatprep.subr.bf16.mxu0 %v508_v16 }
  0x37   :  { %473 = vmatprep.subr.bf16.mxu1 %v509_v17 }
  0x39   :  { %452 = vmatpush3.bf16.msra.mxu0 %v510_v18 }
  0x3a   :  { %474 = vmatpush3.bf16.msra.mxu1 %v511_v19  ;;  %453 = vmatprep.subr.bf16.mxu0 %v512_v20 }
  0x3b   :  { %475 = vmatprep.subr.bf16.mxu1 %v513_v21 }
  0x3d   :  { %454 = vmatpush3.bf16.msra.mxu0 %v514_v22 }
  0x3e   :  { %476 = vmatpush3.bf16.msra.mxu1 %v515_v23  ;;  %455 = vmatprep.subr.bf16.mxu0 %v516_v24 }
  0x3f   :  { %477 = vmatprep.subr.bf16.mxu1 %v517_v25 }
  0x41   :  { %456 = vmatpush3.bf16.msra.mxu0 %v518_v26 }
  0x42   :  { %478 = vmatpush3.bf16.msra.mxu1 %v519_v27  ;;  %457 = vmatprep.subr.bf16.mxu0 %v520_v28 }
  0x43   :  { %479 = vmatprep.subr.bf16.mxu1 %v521_v29 }
  0x45   :  { %458 = vmatpush3.bf16.msra.mxu0 %v522_v30 }
  0x46   :  { %480 = vmatpush3.bf16.msra.mxu1 %v523_v31 }
  0x48   :  { %346 = vmatmul.mubr.bf16.vlgmr.msra.gmra.mrb[0].mxu0 %v46_v37 }
  0x49   :  { %386 = vmatmul.mubr.bf16.vlgmr.msra.gmra.mrb[0].mxu1 %v48_v39 }
 0x11b   :  { %v459_v40 = vpop.f32.mrb[0].mxu0 }
 0x11c   :  { %v481_v41 = vpop.f32.mrb[0].mxu1  ;;  %v460_v43 = vpop.f32.mrb[1].mxu0 }
 0x11d   :  { %v482_v44 = vpop.f32.mrb[1].mxu1  ;;  %v461_v45 = vadd.f32 %v460_v43, %v459_v40  ;;  %v462_v47 = vpop.f32.mrb[2].mxu0 }
 0x11e   :  { %v483_v46 = vadd.f32 %v482_v44, %v481_v41  ;;  %v484_v48 = vpop.f32.mrb[2].mxu1  ;;  %v463_v49 = vpop.f32.mrb[3].mxu0 }
 0x11f   :  { %v485_v50 = vpop.f32.mrb[3].mxu1  ;;  %v348_v51 = vadd.f32 %v461_v45, %v410_v42 }
 0x121   :  { %v388_v52 = vadd.f32 %v483_v46, %v348_v51 }
 0x123   :  { %393 = vst [vmem:[#allocation7] sm:$0xff] %v388_v52 }
 0x124   :  { %579 = shalt.err (!%p576_p6)
}
 0x125   :  { %s580_s15 = scalar_lea.hbm %s670_s3, 128 }
 0x126   :  { %p581_p7 = scmp.ne.s32.totalorder %s670_s3, %s580_s15  ;;  %p584_p8 = scmp.lt.u32.totalorder %s580_s15, %s670_s3 }
 0x128   :  { %p586_p9 = pnand %p584_p8, %p581_p7 }
 0x12a   :  { %589 = shalt.err (!%p586_p9)
}
 0x12b   :  { %403 = dma.vmem_to_hbm [thread:$0]  %s401_s12, 128, %s670_s3, [#allocation4]  }
 0x12c   :  { %594 = dma.done.wait [#allocation4], 128  }
 0x12d   :  { %595 = vsyncadd [#allocation4], 4294967168 }
 0x12e   :  { %407 = vsyncpa [#allocation3], 1 }
 0x12f   :  { %408 = vsyncpa [#allocation6], 1 }
 0x130   :  { %409 = vsyncpa [#allocation4], 1 }

// kernel: tpu_custom_call.1
= control target key start
LH: loop header
LB: loop body
LE: loop exit
PB: predicated region body
PF: predicated region fallthrough
CT: control target
= control target key end

     0   :  { %8 = vsyncpa [#allocation3], 0  ;;  %s667_s0 = inlined_call_operand.hbm [shape: f32[8,512], index: 0, kind: input, shape index: {}]   ;;  %s668_s1 = inlined_call_operand.hbm [shape: bf16[512,128], index: 1, kind: input, shape index: {}]   ;;  %s669_s2 = inlined_call_operand.vmem [shape: f32[1,128], index: 2, kind: input, shape index: {}]   ;;  %s670_s3 = inlined_call_operand.hbm [shape: f32[8,128], index: 3, kind: output, shape index: {}]  }
   0x1   :  { %9 = vsyncpa [#allocation6], 0 }
   0x2   :  { %10 = vsyncpa [#allocation4], 0  ;;  %s596_s12 = smov [#allocation2]   ;;  %s597_s14 = smov [#allocation5]  }
   0x3   :  { %s17_s13 = sshll.u32 %s596_s12, 4  ;;  %s26_s15 = sshll.u32 %s597_s14, 4  ;;  %s18_s13 = int_to_ptr.vmem [resolvable:$true] %s17_s13  ;;  %s621_s15 = int_to_ptr.vmem [resolvable:$true] %s26_s15 }
   0x4   :  { %s524_s18 = scalar_lea.hbm %s667_s0, 512 }
   0x5   :  { %p525_p0 = scmp.ne.s32.totalorder %s667_s0, %s524_s18  ;;  %p528_p1 = scmp.lt.u32.totalorder %s524_s18, %s667_s0 }
   0x7   :  { %p530_p2 = pnand %p528_p1, %p525_p0 }
   0x9   :  { %533 = shalt.err (!%p530_p2)
}
   0xa   :  { %s534_s23 = scalar_lea.vmem %s18_s13, 512  ;;  %p539_p4 = scmp.lt.s32.totalorder %s18_s13, %s18_s13 }
   0xb   :  { %p535_p3 = scmp.ne.s32.totalorder %s18_s13, %s534_s23  ;;  %p540_p5 = scmp.lt.s32.totalorder %s534_s23, %s534_s23 }
   0xd   :  { %p541_p6 = por %p540_p5, %p539_p4 }
   0xf   :  { %p542_p7 = pnand %p541_p6, %p535_p3 }
  0x11   :  { %545 = shalt.err (!%p542_p7)
}
  0x12   :  { %20 = dma.hbm_to_vmem [thread:$0]  %s667_s0, 512, %s18_s13, [#allocation3]  }
  0x13   :  { %s546_s28 = scalar_lea.hbm %s668_s1, 4096 }
  0x14   :  { %p547_p8 = scmp.ne.s32.totalorder %s668_s1, %s546_s28  ;;  %p550_p9 = scmp.lt.u32.totalorder %s546_s28, %s668_s1 }
  0x16   :  { %p552_p10 = pnand %p550_p9, %p547_p8 }
  0x18   :  { %555 = shalt.err (!%p552_p10)
}
  0x19   :  { %s556_s6 = scalar_lea.vmem %s621_s15, 4096  ;;  %p561_p12 = scmp.lt.s32.totalorder %s621_s15, %s621_s15 }
  0x1a   :  { %p557_p11 = scmp.ne.s32.totalorder %s621_s15, %s556_s6  ;;  %p562_p13 = scmp.lt.s32.totalorder %s556_s6, %s556_s6 }
  0x1c   :  { %p563_p0 = por %p562_p13, %p561_p12 }
  0x1e   :  { %p564_p1 = pnand %p563_p0, %p557_p11 }
  0x20   :  { %567 = shalt.err (!%p564_p1)
}
  0x21   :  { %s598_s0 = smov 64   ;;  %s599_s7 = smov 4  }
  0x22   :  { %32 = dma.hbm_to_vmem [thread:$0]  %s668_s1, 4096, %s621_s15, [#allocation6], %s598_s0, %s598_s0, %s599_s7  }
  0x23   :  { %590 = dma.done.wait [#allocation3], 512  }
  0x24   :  { %591 = vsyncadd [#allocation3], 4294966784 }
  0x25   :  { %592 = dma.done.wait [#allocation6], 4096  }
  0x26   :  { %593 = vsyncadd [#allocation6], 4294963200  ;;  %v492_v0 = vld [vmem:[#allocation5 + $0x40] sm:$0xff]   ;;  %v496_v4 = vld [vmem:[#allocation5 + $0x48] sm:$0xff]   ;;  %s600_s11 = smov [#allocation7]  }
  0x27   :  { %v493_v1 = vld [vmem:[#allocation5 + $0xc0] sm:$0xff]   ;;  %443 = vmatprep.subr.bf16.mxu0 %v492_v0  ;;  %v497_v5 = vld [vmem:[#allocation5 + $0xc8] sm:$0xff]   ;;  %v500_v8 = vld [vmem:[#allocation5 + $0x50] sm:$0xff]   ;;  %s400_s12 = sshll.u32 %s600_s11, 4  ;;  %s401_s12 = int_to_ptr.vmem [resolvable:$true] %s400_s12 }
  0x28   :  { %v494_v2 = vld [vmem:[#allocation5] sm:$0xff]   ;;  %465 = vmatprep.subr.bf16.mxu1 %v493_v1  ;;  %v498_v6 = vld [vmem:[#allocation5 + $0x8] sm:$0xff]   ;;  %v501_v9 = vld [vmem:[#allocation5 + $0xd0] sm:$0xff]   ;;  %s568_s13 = scalar_lea.vmem %s401_s12, 128  ;;  %p573_p3 = scmp.lt.s32.totalorder %s401_s12, %s401_s12 }
  0x29   :  { %v495_v3 = vld [vmem:[#allocation5 + $0x80] sm:$0xff]   ;;  %444 = vmatpush3.bf16.msra.mxu0 %v494_v2  ;;  %v499_v7 = vld [vmem:[#allocation5 + $0x88] sm:$0xff]   ;;  %v502_v10 = vld [vmem:[#allocation5 + $0x10] sm:$0xff]   ;;  %p569_p2 = scmp.ne.s32.totalorder %s401_s12, %s568_s13  ;;  %p574_p4 = scmp.lt.s32.totalorder %s568_s13, %s568_s13 }
  0x2a   :  { %466 = vmatpush3.bf16.msra.mxu1 %v495_v3  ;;  %445 = vmatprep.subr.bf16.mxu0 %v496_v4  ;;  %v503_v11 = vld [vmem:[#allocation5 + $0x90] sm:$0xff]   ;;  %v504_v12 = vld [vmem:[#allocation5 + $0x58] sm:$0xff]   ;;  %v508_v16 = vld [vmem:[#allocation5 + $0x60] sm:$0xff]  }
  0x2b   :  { %467 = vmatprep.subr.bf16.mxu1 %v497_v5  ;;  %v505_v13 = vld [vmem:[#allocation5 + $0xd8] sm:$0xff]   ;;  %v509_v17 = vld [vmem:[#allocation5 + $0xe0] sm:$0xff]   ;;  %v512_v20 = vld [vmem:[#allocation5 + $0x68] sm:$0xff]   ;;  %p575_p5 = por %p574_p4, %p573_p3 }
  0x2c   :  { %v506_v14 = vld [vmem:[#allocation5 + $0x18] sm:$0xff]   ;;  %v510_v18 = vld [vmem:[#allocation5 + $0x20] sm:$0xff]   ;;  %v513_v21 = vld [vmem:[#allocation5 + $0xe8] sm:$0xff]  }
  0x2d   :  { %446 = vmatpush3.bf16.msra.mxu0 %v498_v6  ;;  %v507_v15 = vld [vmem:[#allocation5 + $0x98] sm:$0xff]   ;;  %v511_v19 = vld [vmem:[#allocation5 + $0xa0] sm:$0xff]   ;;  %v514_v22 = vld [vmem:[#allocation5 + $0x28] sm:$0xff]   ;;  %p576_p6 = pnand %p575_p5, %p569_p2 }
  0x2e   :  { %468 = vmatpush3.bf16.msra.mxu1 %v499_v7  ;;  %447 = vmatprep.subr.bf16.mxu0 %v500_v8  ;;  %v515_v23 = vld [vmem:[#allocation5 + $0xa8] sm:$0xff]   ;;  %v516_v24 = vld [vmem:[#allocation5 + $0x70] sm:$0xff]   ;;  %v520_v28 = vld [vmem:[#allocation5 + $0x78] sm:$0xff]  }
  0x2f   :  { %469 = vmatprep.subr.bf16.mxu1 %v501_v9  ;;  %v517_v25 = vld [vmem:[#allocation5 + $0xf0] sm:$0xff]   ;;  %v521_v29 = vld [vmem:[#allocation5 + $0xf8] sm:$0xff]   ;;  %v43_v32 = vld [vmem:[#allocation2 + $0x8] sm:$0xff] }
  0x30   :  { %v518_v26 = vld [vmem:[#allocation5 + $0x30] sm:$0xff]   ;;  %v522_v30 = vld [vmem:[#allocation5 + $0x38] sm:$0xff]   ;;  %v42_v34 = vld [vmem:[#allocation2] sm:$0xff]  ;;  %v47_v35 = vpack.c.bf16 %v43_v32, %v43_v32 }
  0x31   :  { %448 = vmatpush3.bf16.msra.mxu0 %v502_v10  ;;  %v519_v27 = vld [vmem:[#allocation5 + $0xb0] sm:$0xff]   ;;  %v523_v31 = vld [vmem:[#allocation5 + $0xb8] sm:$0xff]   ;;  %v46_v37 = vpack.c.bf16 %v42_v34, %v42_v34  ;;  %v410_v42 = vld [vmem:[%s669_s2] ss:$0 sm:$0xff] }
  0x32   :  { %470 = vmatpush3.bf16.msra.mxu1 %v503_v11  ;;  %449 = vmatprep.subr.bf16.mxu0 %v504_v12  ;;  %v45_v33 = vld [vmem:[#allocation2 + $0x18] sm:$0xff]  ;;  %v44_v38 = vld [vmem:[#allocation2 + $0x10] sm:$0xff] }
  0x33   :  { %471 = vmatprep.subr.bf16.mxu1 %v505_v13  ;;  %v49_v36 = vpack.c.bf16 %v45_v33, %v45_v33  ;;  %v48_v39 = vpack.c.bf16 %v44_v38, %v44_v38  ;;  %345 = vmatprep.mubr.bf16.mxu0 %v47_v35 }
  0x35   :  { %450 = vmatpush3.bf16.msra.mxu0 %v506_v14  ;;  %385 = vmatprep.mubr.bf16.mxu1 %v49_v36 }
  0x36   :  { %472 = vmatpush3.bf16.msra.mxu1 %v507_v15  ;;  %451 = vmatprep.subr.bf16.mxu0 %v508_v16 }
  0x37   :  { %473 = vmatprep.subr.bf16.mxu1 %v509_v17 }
  0x39   :  { %452 = vmatpush3.bf16.msra.mxu0 %v510_v18 }
  0x3a   :  { %474 = vmatpush3.bf16.msra.mxu1 %v511_v19  ;;  %453 = vmatprep.subr.bf16.mxu0 %v512_v20 }
  0x3b   :  { %475 = vmatprep.subr.bf16.mxu1 %v513_v21 }
  0x3d   :  { %454 = vmatpush3.bf16.msra.mxu0 %v514_v22 }
  0x3e   :  { %476 = vmatpush3.bf16.msra.mxu1 %v515_v23  ;;  %455 = vmatprep.subr.bf16.mxu0 %v516_v24 }
  0x3f   :  { %477 = vmatprep.subr.bf16.mxu1 %v517_v25 }
  0x41   :  { %456 = vmatpush3.bf16.msra.mxu0 %v518_v26 }
  0x42   :  { %478 = vmatpush3.bf16.msra.mxu1 %v519_v27  ;;  %457 = vmatprep.subr.bf16.mxu0 %v520_v28 }
  0x43   :  { %479 = vmatprep.subr.bf16.mxu1 %v521_v29 }
  0x45   :  { %458 = vmatpush3.bf16.msra.mxu0 %v522_v30 }
  0x46   :  { %480 = vmatpush3.bf16.msra.mxu1 %v523_v31 }
  0x48   :  { %346 = vmatmul.mubr.bf16.vlgmr.msra.gmra.mrb[0].mxu0 %v46_v37 }
  0x49   :  { %386 = vmatmul.mubr.bf16.vlgmr.msra.gmra.mrb[0].mxu1 %v48_v39 }
 0x11b   :  { %v459_v40 = vpop.f32.mrb[0].mxu0 }
 0x11c   :  { %v481_v41 = vpop.f32.mrb[0].mxu1  ;;  %v460_v43 = vpop.f32.mrb[1].mxu0 }
 0x11d   :  { %v482_v44 = vpop.f32.mrb[1].mxu1  ;;  %v461_v45 = vadd.f32 %v460_v43, %v459_v40  ;;  %v462_v47 = vpop.f32.mrb[2].mxu0 }
 0x11e   :  { %v483_v46 = vadd.f32 %v482_v44, %v481_v41  ;;  %v484_v48 = vpop.f32.mrb[2].mxu1  ;;  %v463_v49 = vpop.f32.mrb[3].mxu0 }
 0x11f   :  { %v485_v50 = vpop.f32.mrb[3].mxu1  ;;  %v348_v51 = vadd.f32 %v461_v45, %v410_v42 }
 0x121   :  { %v388_v52 = vadd.f32 %v483_v46, %v348_v51 }
 0x123   :  { %393 = vst [vmem:[#allocation7] sm:$0xff] %v388_v52 }
 0x124   :  { %579 = shalt.err (!%p576_p6)
}
 0x125   :  { %s580_s15 = scalar_lea.hbm %s670_s3, 128 }
 0x126   :  { %p581_p7 = scmp.ne.s32.totalorder %s670_s3, %s580_s15  ;;  %p584_p8 = scmp.lt.u32.totalorder %s580_s15, %s670_s3 }
 0x128   :  { %p586_p9 = pnand %p584_p8, %p581_p7 }
 0x12a   :  { %589 = shalt.err (!%p586_p9)
}
 0x12b   :  { %403 = dma.vmem_to_hbm [thread:$0]  %s401_s12, 128, %s670_s3, [#allocation4]  }
 0x12c   :  { %594 = dma.done.wait [#allocation4], 128  }
 0x12d   :  { %595 = vsyncadd [#allocation4], 4294967168 }
 0x12e   :  { %407 = vsyncpa [#allocation3], 1 }
 0x12f   :  { %408 = vsyncpa [#allocation6], 1 }
 0x130   :  { %409 = vsyncpa [#allocation4], 1 }

</bundles_post_ra>
